<compile_context>
chip_gen: v7x
topology: tpu7x:2x2x1
jax: 0.10.0
libtpu: 0.0.40
codegen_flags: <defaults>
</compile_context>

<pallas_src>
import jax
import jax.numpy as jnp
from jax.experimental import pallas as pl
from jax.experimental.pallas import tpu as pltpu


def _linear_kernel(x_ref, w_ref, b_ref, o_ref):
    """out[:, o] = sum_k x[:, k] * w[o*IN + k] + b[o]   (pure VPU multiply-adds).

    x_ref: (TB, IN)  VMEM block -- natural row-major layout of x
    w_ref: (OUT*IN,) SMEM       -- row-major flattened PyTorch weight (OUT, IN)
    b_ref: (OUT,)    SMEM
    o_ref: (TB, OUT) VMEM block
    """
    in_f = x_ref.shape[1]
    out_f = o_ref.shape[1]
    x = x_ref[...]                                     # (TB, IN), loaded once
    for o in range(out_f):                             # static (OUT == 1)
        acc = x[:, 0:1] * w_ref[o * in_f + 0]
        for k in range(1, in_f):                       # static (IN == 5) -> unrolled
            acc = acc + x[:, k:k + 1] * w_ref[o * in_f + k]
        o_ref[:, o:o + 1] = (acc + b_ref[o]).astype(o_ref.dtype)


def _round_up(v, m):
    return ((v + m - 1) // m) * m


def _vmem_capacity_bytes():
    try:
        return int(pltpu.get_tpu_info().vmem_capacity_bytes)
    except Exception:
        return 64 * 1024 * 1024        # conservative: v7x per-TensorCore VMEM


def liner_model_forward(x, weight, bias, *, batch_tile=None):
    """Forward pass of Liner_Model (y = x @ W.T + b).

    Args:
      x:      (B, 5)  float32
      weight: (1, 5)  float32  -- PyTorch nn.Linear weight layout (OUT, IN)
      bias:   (1,)    float32
    Returns:
      (B, 1) float32
    """
    B, in_f = x.shape
    out_f, in_f_w = weight.shape
    assert in_f == in_f_w, "weight/input feature mismatch"

    w_flat = weight.reshape(-1).astype(jnp.float32)    # (OUT*IN,) for SMEM
    b_flat = bias.reshape(-1).astype(jnp.float32)      # (OUT,)    for SMEM

    # --- generation-aware tile / VMEM budget -------------------------------
    vmem_cap = _vmem_capacity_bytes()
    vmem_limit = (vmem_cap * 3) // 4                   # 48 MiB (v7x) / 96 MiB (v5e, v6e)

    # VMEM per batch row: (TB, IN) input + (TB, OUT) output blocks, each
    # lane-padded to 128 lanes, f32, and double-buffered by Pallas.
    def lane_pad(n):
        return _round_up(n, 128)

    bytes_per_row = (lane_pad(in_f) + lane_pad(out_f)) * 4 * 2
    headroom = 4 * 1024 * 1024
    max_rows = max((vmem_limit - headroom) // bytes_per_row, 1024)
    max_rows = (max_rows // 512) * 512                 # keep sublane/lane friendly

    if batch_tile is not None:
        block_b = max((min(batch_tile, max_rows) // 8) * 8, 8)
    else:
        # >= 4 grid steps at large B (both v7x TCs busy, pipeline full), but
        # never below 1024 rows/step (per-step overhead) nor above VMEM budget.
        quarter = _round_up(pl.cdiv(B, 4), 128)
        block_b = min(max_rows, max(quarter, 1024))
    block_b = min(block_b, B)                          # tiny batch: one full block
    grid = (pl.cdiv(B, block_b),)

    out = pl.pallas_call(
        _linear_kernel,
        out_shape=jax.ShapeDtypeStruct((B, out_f), x.dtype),
        grid_spec=pltpu.PrefetchScalarGridSpec(
            num_scalar_prefetch=0,
            grid=grid,
            in_specs=[
                # x tile in its natural (rows, features) layout: dense HBM read.
                pl.BlockSpec((block_b, in_f), lambda i: (i, 0)),
                # weight / bias: tiny scalars, keep them on the scalar path.
                pl.BlockSpec(memory_space=pltpu.MemorySpace.SMEM),
                pl.BlockSpec(memory_space=pltpu.MemorySpace.SMEM),
            ],
            out_specs=pl.BlockSpec((block_b, out_f), lambda i: (i, 0)),
        ),
        compiler_params=pltpu.CompilerParams(
            dimension_semantics=("parallel",),         # shard grid on v7x's two TCs
            vmem_limit_bytes=int(vmem_limit),
        ),
    )(x, w_flat, b_flat)

    return out                                          # already (B, OUT)


if __name__ == "__main__":
    key = jax.random.PRNGKey(0)
    kx, kw, kb = jax.random.split(key, 3)

    B, IN, OUT = 8, 5, 1

    x = jax.random.normal(kx, (B, IN), dtype=jnp.float32)

    # Parameter init mimicking PyTorch's U(-1/sqrt(IN), 1/sqrt(IN)).
    bound = 1.0 / jnp.sqrt(jnp.float32(IN))
    weight = jax.random.uniform(kw, (OUT, IN), dtype=jnp.float32,
                                minval=-bound, maxval=bound)
    bias = jax.random.uniform(kb, (OUT,), dtype=jnp.float32,
                              minval=-bound, maxval=bound)

    out = jax.block_until_ready(liner_model_forward(x, weight, bias))
    ref = x @ weight.T + bias
    assert out.shape == (B, OUT)
    assert jnp.allclose(out, ref, atol=1e-5, rtol=1e-5)

    # Exercise the tiled, multi-block path (including a partial last block)
    # with a small forced tile so the test stays fast.
    B2 = 3000
    x2 = jax.random.normal(kx, (B2, IN), dtype=jnp.float32)
    out2 = jax.block_until_ready(
        liner_model_forward(x2, weight, bias, batch_tile=1024))
    ref2 = x2 @ weight.T + bias
    assert out2.shape == (B2, OUT)
    assert jnp.allclose(out2, ref2, atol=1e-5, rtol=1e-5)

    print("KERNEL_OK")
</pallas_src>

<mosaic_0001>
module attributes {stable_mosaic.version = 11 : i64} {
  func.func @_linear_kernel(%arg0: i32, %arg1: memref<8x5xf32, #tpu.memory_space<vmem>>, %arg2: memref<5xf32, #tpu.memory_space<smem>>, %arg3: memref<1xf32, #tpu.memory_space<smem>>, %arg4: memref<8x1xf32, #tpu.memory_space<vmem>>) attributes {dimension_semantics = [#tpu.dimension_semantics<parallel>], iteration_bounds = array<i64: 1>, scalar_prefetch = 0 : i64, scratch_operands = 0 : i64, tpu.core_type = #tpu.core_type<tc>, window_params = [{transform_indices = @transform_0, window_bounds = array<i64: 8, 5>}, {transform_indices = @transform_1, window_bounds = array<i64: 5>}, {transform_indices = @transform_2, window_bounds = array<i64: 1>}, {transform_indices = @transform_3, window_bounds = array<i64: 8, 1>}]} {
    %c0 = arith.constant 0 : index
    %c0_0 = arith.constant 0 : index
    %0 = vector.load %arg1[%c0, %c0_0] : memref<8x5xf32, #tpu.memory_space<vmem>>, vector<8x5xf32>
    %1 = vector.extract_strided_slice %0 {offsets = [0, 0], sizes = [8, 1], strides = [1, 1]} : vector<8x5xf32> to vector<8x1xf32>
    %c0_1 = arith.constant 0 : index
    %2 = memref.load %arg2[%c0_1] : memref<5xf32, #tpu.memory_space<smem>>
    %3 = vector.broadcast %2 : f32 to vector<8x1xf32>
    %4 = arith.mulf %1, %3 : vector<8x1xf32>
    %5 = vector.extract_strided_slice %0 {offsets = [0, 1], sizes = [8, 1], strides = [1, 1]} : vector<8x5xf32> to vector<8x1xf32>
    %c1 = arith.constant 1 : index
    %6 = memref.load %arg2[%c1] : memref<5xf32, #tpu.memory_space<smem>>
    %7 = vector.broadcast %6 : f32 to vector<8x1xf32>
    %8 = arith.mulf %5, %7 : vector<8x1xf32>
    %9 = arith.addf %4, %8 : vector<8x1xf32>
    %10 = vector.extract_strided_slice %0 {offsets = [0, 2], sizes = [8, 1], strides = [1, 1]} : vector<8x5xf32> to vector<8x1xf32>
    %c2 = arith.constant 2 : index
    %11 = memref.load %arg2[%c2] : memref<5xf32, #tpu.memory_space<smem>>
    %12 = vector.broadcast %11 : f32 to vector<8x1xf32>
    %13 = arith.mulf %10, %12 : vector<8x1xf32>
    %14 = arith.addf %9, %13 : vector<8x1xf32>
    %15 = vector.extract_strided_slice %0 {offsets = [0, 3], sizes = [8, 1], strides = [1, 1]} : vector<8x5xf32> to vector<8x1xf32>
    %c3 = arith.constant 3 : index
    %16 = memref.load %arg2[%c3] : memref<5xf32, #tpu.memory_space<smem>>
    %17 = vector.broadcast %16 : f32 to vector<8x1xf32>
    %18 = arith.mulf %15, %17 : vector<8x1xf32>
    %19 = arith.addf %14, %18 : vector<8x1xf32>
    %20 = vector.extract_strided_slice %0 {offsets = [0, 4], sizes = [8, 1], strides = [1, 1]} : vector<8x5xf32> to vector<8x1xf32>
    %c4 = arith.constant 4 : index
    %21 = memref.load %arg2[%c4] : memref<5xf32, #tpu.memory_space<smem>>
    %22 = vector.broadcast %21 : f32 to vector<8x1xf32>
    %23 = arith.mulf %20, %22 : vector<8x1xf32>
    %24 = arith.addf %19, %23 : vector<8x1xf32>
    %c0_2 = arith.constant 0 : index
    %25 = memref.load %arg3[%c0_2] : memref<1xf32, #tpu.memory_space<smem>>
    %26 = vector.broadcast %25 : f32 to vector<8x1xf32>
    %27 = arith.addf %24, %26 : vector<8x1xf32>
    %c0_3 = arith.constant 0 : index
    %c0_4 = arith.constant 0 : index
    %28 = vector.load %arg4[%c0_3, %c0_4] : memref<8x1xf32, #tpu.memory_space<vmem>>, vector<8x1xf32>
    tpu.vector_store %arg4[%c0_3, %c0_4], %27 {strides = array<i32>} : memref<8x1xf32, #tpu.memory_space<vmem>>, vector<8x1xf32>,
    return
  }
  func.func @transform_0(%arg0: i32) -> (i32, i32) {
    %c0_i32 = arith.constant 0 : i32
    %c0_i32_0 = arith.constant 0 : i32
    return %arg0, %c0_i32 : i32, i32
  }
  func.func @transform_1(%arg0: i32) -> i32 {
    %c0_i32 = arith.constant 0 : i32
    %c0_i32_0 = arith.constant 0 : i32
    return %c0_i32 : i32
  }
  func.func @transform_2(%arg0: i32) -> i32 {
    %c0_i32 = arith.constant 0 : i32
    %c0_i32_0 = arith.constant 0 : i32
    return %c0_i32 : i32
  }
  func.func @transform_3(%arg0: i32) -> (i32, i32) {
    %c0_i32 = arith.constant 0 : i32
    %c0_i32_0 = arith.constant 0 : i32
    return %arg0, %c0_i32 : i32, i32
  }
}

</mosaic_0001>

<bundles_post_ra>
// kernel: tpu_custom_call.1
= control target key start
LH: loop header
LB: loop body
LE: loop exit
PB: predicated region body
PF: predicated region fallthrough
CT: control target
= control target key end

     0   :  { %9 = vsyncpa [#allocation4], 0  ;;  %s182_s0 = inlined_call_operand.hbm [shape: f32[8,5], index: 0, kind: input, shape index: {}]   ;;  %s183_s1 = inlined_call_operand.vmem [shape: f32[5], index: 1, kind: input, shape index: {}]   ;;  %s184_s2 = inlined_call_operand.<no memory space> [shape: f32[1], index: 2, kind: input, shape index: {}]   ;;  %s185_s3 = inlined_call_operand.vmem [shape: f32[8,1], index: 3, kind: output, shape index: {}]  }
   0x1   :  { %10 = vsyncpa [#allocation5], 0  ;;  %s27_s14 = sshll.u32 %s183_s1, 4  ;;  %s135_s15 = smov [#allocation3]   ;;  %s28_s14 = int_to_ptr.vmem [resolvable:$true] %s27_s14 }
   0x2   :  { %s17_s16 = sshll.u32 %s135_s15, 4  ;;  %s97_s19 = scalar_lea.hbm %s182_s0, 128  ;;  %s18_s16 = int_to_ptr.vmem [resolvable:$true] %s17_s16 }
   0x3   :  { %p98_p0 = scmp.ne.s32.totalorder %s182_s0, %s97_s19  ;;  %p101_p1 = scmp.lt.u32.totalorder %s97_s19, %s182_s0 }
   0x5   :  { %p103_p2 = pnand %p101_p1, %p98_p0 }
   0x7   :  { %106 = shalt.err (!%p103_p2)
}
   0x8   :  { %s107_s24 = scalar_lea.vmem %s18_s16, 128  ;;  %p112_p4 = scmp.lt.s32.totalorder %s18_s16, %s18_s16 }
   0x9   :  { %p108_p3 = scmp.ne.s32.totalorder %s18_s16, %s107_s24  ;;  %p113_p5 = scmp.lt.s32.totalorder %s107_s24, %s107_s24 }
   0xb   :  { %p114_p6 = por %p113_p5, %p112_p4 }
   0xd   :  { %p115_p7 = pnand %p114_p6, %p108_p3 }
   0xf   :  { %118 = shalt.err (!%p115_p7)
}
  0x10   :  { %20 = dma.hbm_to_vmem [thread:$0]  %s182_s0, 128, %s18_s16, [#allocation4]  }
  0x11   :  { %s119_s26 = scalar_lea.vmem %s28_s14, 16  ;;  %p124_p9 = scmp.lt.s32.totalorder %s28_s14, %s28_s14 }
  0x12   :  { %p120_p8 = scmp.ne.s32.totalorder %s28_s14, %s119_s26  ;;  %p125_p10 = scmp.lt.s32.totalorder %s119_s26, %s119_s26 }
  0x14   :  { %p126_p11 = por %p125_p10, %p124_p9 }
  0x16   :  { %p127_p12 = pnand %p126_p11, %p120_p8 }
  0x18   :  { %130 = shalt.err (!%p127_p12)
}
  0x19   :  { %s136_s27 = smov [#allocation6]  }
  0x1a   :  { %30 = dma.vmem_to_smem %s28_s14, 16, %s136_s27, [#allocation5]  }
  0x1b   :  { %131 = dma.done.wait [#allocation4], 128  }
  0x1c   :  { %132 = vsyncadd [#allocation4], 4294967168 }
  0x1d   :  { %133 = dma.done.wait [#allocation5], 16  }
  0x1e   :  { %134 = vsyncadd [#allocation5], 4294967280 }
  0x1f   :  { %39 = sfence }
  0x20   :  { %s87_s28 = sld [smem:[#allocation6 + $0x1]]  ;;  %s89_s29 = sld [smem:[#allocation6 + $0x3]]  ;;  %v40_v0 = vld [vmem:[#allocation3] sm:$0xff]  ;;  %v77_v18 = vstv %s184_s2  ;;  %vm79_vm0 = vcmask 7168  }
  0x21   :  { %s88_s30 = sld [smem:[#allocation6 + $0x2]]  ;;  %s90_s4 = sld [smem:[#allocation6 + $0x4]] }
  0x22   :  { %s137_s0 = smov 127   ;;  %s138_s5 = smov 125  }
  0x23   :  { %s139_s6 = smov 126   ;;  %s140_s7 = smov 124  }
  0x24   :  { %s41_s8 = sld [smem:[#allocation6]] }
  0x26   :  { %v45_v1 = vstv %s87_s28  ;;  %v61_v3 = vstv %s89_s29 }
  0x27   :  { %v46_v2 = vmul.f32 %v45_v1, %v40_v0  ;;  %v62_v4 = vmul.f32 %v61_v3, %v40_v0  ;;  %v53_v5 = vstv %s88_s30  ;;  %v69_v7 = vstv %s90_s4 }
  0x28   :  { %v54_v6 = vmul.f32 %v53_v5, %v40_v0  ;;  %v70_v8 = vmul.f32 %v69_v7, %v40_v0 }
  0x29   :  { %48 = vrot.lane.b32.xlu0 %v46_v2, %s137_s0  ;;  %64 = vrot.lane.b32.xlu1 %v62_v4, %s138_s5 }
  0x2a   :  { %v42_v9 = vstv %s41_s8 }
  0x2b   :  { %v43_v10 = vmul.f32 %v42_v9, %v40_v0 }
  0x2d   :  { %56 = vrot.lane.b32.xlu0 %v54_v6, %s139_s6  ;;  %72 = vrot.lane.b32.xlu1 %v70_v8, %s140_s7 }
  0x9b   :  { %v49_v11 = vpop.permute.xlu0 %48  ;;  %v65_v12 = vpop.permute.xlu1 %64 }
  0x9c   :  { %v51_v13 = vadd.f32 %v49_v11, %v43_v10 }
  0x9f   :  { %v57_v14 = vpop.permute.xlu0 %56  ;;  %v73_v16 = vpop.permute.xlu1 %72 }
  0xa0   :  { %v59_v15 = vadd.f32 %v57_v14, %v51_v13 }
  0xa2   :  { %v67_v17 = vadd.f32 %v65_v12, %v59_v15 }
  0xa4   :  { %v75_v19 = vadd.f32 %v73_v16, %v67_v17 }
  0xa6   :  { %v78_v20 = vadd.f32 %v77_v18, %v75_v19 }
  0xa8   :  { %80 = vst.msk [vmem:[%s185_s3] sm:$0xff] %vm79_vm0, %v78_v20 }
  0xa9   :  { %85 = vsyncpa [#allocation4], 1 }
  0xaa   :  { %86 = vsyncpa [#allocation5], 1 }

</bundles_post_ra>
